<compile_context>
chip_gen: v5e
topology: v5e:2x2
jax: 0.10.0
libtpu: 0.0.40
codegen_flags: <defaults>
</compile_context>

<pallas_src>
import functools

import jax
import jax.numpy as jnp
from jax import lax
from jax.experimental import pallas as pl
from jax.experimental.pallas import tpu as pltpu


def _dilconv_kernel(x_ref, w_ref, out_ref, *, K, stride, dilation, th, W_out, C_in):
    # x_ref  : (1, C_in, H_pad, W_pad)  -- whole padded plane of one batch element (resident)
    # w_ref  : (C_out, K*K*C_in)        -- fused (pointwise x depthwise) weights
    # out_ref: (1, C_out, th*W_out)     -- lane-dense flat output tile (output rows [h0, h0+th))
    h_tile = pl.program_id(1)
    row0 = pl.multiple_of(h_tile * (th * stride), th * stride)
    rows_needed = stride * (th - 1) + dilation * (K - 1) + 1
    row_span = stride * (th - 1) + 1
    col_span = stride * (W_out - 1) + 1

    # Load only the input rows this tile needs; ReLU once on that slab (pad zeros stay zero).
    x = jnp.maximum(x_ref[0, :, pl.ds(row0, rows_needed), :], 0.0)  # (C_in, rows_needed, W_pad)

    # Build the im2col slab; rows ordered (kh, kw)-major / c_in-minor to match W_fused layout.
    taps = []
    for kh in range(K):
        for kw in range(K):
            p = x[:,
                  kh * dilation: kh * dilation + row_span: stride,
                  kw * dilation: kw * dilation + col_span: stride]      # (C_in, th, W_out)
            taps.append(p.reshape(C_in, th * W_out))
    slab = jnp.concatenate(taps, axis=0)                                # (K*K*C_in, th*W_out)

    # Single MXU matmul replaces depthwise MAC chain + pointwise matmul.
    out = jnp.dot(w_ref[...], slab, preferred_element_type=jnp.float32)
    out_ref[0] = out.astype(out_ref.dtype)


def _choose_row_tile(H_out, W_out):
    """Largest th < H_out dividing H_out with lane-dense flattened width
    (th*W_out % 128 == 0, <= 2048). Falls back to the whole plane."""
    for th in range(H_out - 1, 0, -1):
        if H_out % th == 0 and (th * W_out) % 128 == 0 and th * W_out <= 2048:
            return th
    return H_out


def dil_conv(x, dw_w, pw_w, *, kernel_size, stride, padding, dilation):
    """DilConv forward: ReLU -> depthwise dilated conv -> pointwise 1x1 conv (NCHW).

    x:    (N, C_in, H, W) float32
    dw_w: (C_in, K, K)    depthwise weights (groups = C_in)
    pw_w: (C_out, C_in)   pointwise 1x1 weights
    """
    N, C_in, H, W = x.shape
    C_out = pw_w.shape[0]
    K = kernel_size
    H_out = (H + 2 * padding - dilation * (K - 1) - 1) // stride + 1
    W_out = (W + 2 * padding - dilation * (K - 1) - 1) // stride + 1

    # Zero-pad spatially in JAX glue (ReLU(0) == 0, so pad-before-ReLU is exact).
    x_pad = jnp.pad(x, ((0, 0), (0, 0), (padding, padding), (padding, padding)))
    H_pad, W_pad = x_pad.shape[2], x_pad.shape[3]

    # Fuse depthwise + pointwise weights (exact: no bias / nonlinearity between the convs).
    # Row order must match the in-kernel slab: (kh, kw)-major, c_in-minor.
    w_fused = pw_w[:, :, None, None] * dw_w[None, :, :, :]             # (C_out, C_in, K, K)
    w_fused = jnp.transpose(w_fused, (0, 2, 3, 1)).reshape(C_out, K * K * C_in)

    th = _choose_row_tile(H_out, W_out)
    n_h_tiles = H_out // th

    kernel = functools.partial(
        _dilconv_kernel, K=K, stride=stride, dilation=dilation,
        th=th, W_out=W_out, C_in=C_in)

    cost = pl.CostEstimate(
        flops=2 * N * C_out * (C_in * K * K) * H_out * W_out,
        transcendentals=0,
        bytes_accessed=4 * (int(x_pad.size) + C_out * K * K * C_in
                            + N * C_out * H_out * W_out),
    )

    out_flat = pl.pallas_call(
        kernel,
        out_shape=jax.ShapeDtypeStruct((N, C_out, H_out * W_out), x.dtype),
        grid_spec=pltpu.PrefetchScalarGridSpec(
            num_scalar_prefetch=0,
            grid=(N, n_h_tiles),
            in_specs=[
                # Whole padded plane per batch element; resident across the h axis
                # (constant block index -> no re-DMA per h tile).
                pl.BlockSpec((1, C_in, H_pad, W_pad), lambda n, h: (n, 0, 0, 0)),
                # Fused weights: constant index map -> loaded once.
                pl.BlockSpec((C_out, K * K * C_in), lambda n, h: (0, 0)),
            ],
            out_specs=pl.BlockSpec((1, C_out, th * W_out), lambda n, h: (n, 0, h)),
        ),
        compiler_params=pltpu.CompilerParams(
            dimension_semantics=("parallel", "parallel")),
        cost_estimate=cost,
    )(x_pad, w_fused)

    return out_flat.reshape(N, C_out, H_out, W_out)


def dil_conv_ref(x, dw_w, pw_w, *, kernel_size, stride, padding, dilation):
    """Pure-JAX reference matching the torch module (NCHW)."""
    C_in = x.shape[1]
    C_out = pw_w.shape[0]
    y = jnp.maximum(x, 0.0)
    dw = lax.conv_general_dilated(
        y, dw_w.reshape(C_in, 1, kernel_size, kernel_size),
        window_strides=(stride, stride),
        padding=[(padding, padding), (padding, padding)],
        rhs_dilation=(dilation, dilation),
        dimension_numbers=("NCHW", "OIHW", "NCHW"),
        feature_group_count=C_in)
    return lax.conv_general_dilated(
        dw, pw_w.reshape(C_out, C_in, 1, 1),
        window_strides=(1, 1), padding=[(0, 0), (0, 0)],
        dimension_numbers=("NCHW", "OIHW", "NCHW"))


if __name__ == "__main__":
    # DilConv(C_in=4, C_out=8, kernel_size=3, stride=1, padding=2, dilation=2)
    N, C_in, H, W = 2, 4, 16, 16
    C_out, K, stride, padding, dilation = 8, 3, 1, 2, 2

    key = jax.random.PRNGKey(0)
    kx, kdw, kpw = jax.random.split(key, 3)
    x = jax.random.normal(kx, (N, C_in, H, W), dtype=jnp.float32)
    dw_w = 0.1 * jax.random.normal(kdw, (C_in, K, K), dtype=jnp.float32)
    pw_w = 0.1 * jax.random.normal(kpw, (C_out, C_in), dtype=jnp.float32)

    out = dil_conv(x, dw_w, pw_w, kernel_size=K, stride=stride,
                   padding=padding, dilation=dilation)
    out = jax.block_until_ready(out)

    ref = dil_conv_ref(x, dw_w, pw_w, kernel_size=K, stride=stride,
                       padding=padding, dilation=dilation)
    ref = jax.block_until_ready(ref)

    assert out.shape == (N, C_out, H, W), out.shape
    assert jnp.allclose(out, ref, atol=1e-5, rtol=1e-5), float(
        jnp.max(jnp.abs(out - ref)))
    print("KERNEL_OK")
</pallas_src>

<mosaic_0001>
module attributes {stable_mosaic.version = 11 : i64} {
  func.func @_dilconv_kernel(%arg0: i32, %arg1: i32, %arg2: memref<1x4x20x20xf32, #tpu.memory_space<vmem>>, %arg3: memref<8x36xf32, #tpu.memory_space<vmem>>, %arg4: memref<1x8x128xf32, #tpu.memory_space<vmem>>) attributes {dimension_semantics = [#tpu.dimension_semantics<parallel>, #tpu.dimension_semantics<parallel>], iteration_bounds = array<i64: 2, 2>, scalar_prefetch = 0 : i64, scratch_operands = 0 : i64, tpu.core_type = #tpu.core_type<tc>, window_params = [{transform_indices = @transform_0, window_bounds = array<i64: 1, 4, 20, 20>}, {pipeline_mode = #tpu.pipeline_mode<synchronous>, transform_indices = @transform_1, window_bounds = array<i64: 8, 36>}, {transform_indices = @transform_2, window_bounds = array<i64: 1, 8, 128>}]} {
    %c8_i32 = arith.constant 8 : i32
    %0 = arith.muli %arg1, %c8_i32 : i32
    %1 = tpu.assume_multiple %0, 8 : i32
    %c0 = arith.constant 0 : index
    %c0_0 = arith.constant 0 : index
    %2 = arith.index_cast %1 : i32 to index
    %c0_1 = arith.constant 0 : index
    %3 = vector.load %arg2[%c0, %c0_0, %2, %c0_1] : memref<1x4x20x20xf32, #tpu.memory_space<vmem>>, vector<1x4x12x20xf32>
    %4 = vector.shape_cast %3 : vector<1x4x12x20xf32> to vector<4x12x20xf32>
    %cst = arith.constant 0.000000e+00 : f32
    %5 = vector.broadcast %cst : f32 to vector<4x12x20xf32>
    %6 = arith.maximumf %4, %5 : vector<4x12x20xf32>
    %7 = vector.extract_strided_slice %6 {offsets = [0, 0, 0], sizes = [4, 8, 16], strides = [1, 1, 1]} : vector<4x12x20xf32> to vector<4x8x16xf32>
    %8 = vector.shape_cast %7 : vector<4x8x16xf32> to vector<4x128xf32>
    %9 = vector.extract_strided_slice %6 {offsets = [0, 0, 2], sizes = [4, 8, 16], strides = [1, 1, 1]} : vector<4x12x20xf32> to vector<4x8x16xf32>
    %10 = vector.shape_cast %9 : vector<4x8x16xf32> to vector<4x128xf32>
    %11 = vector.extract_strided_slice %6 {offsets = [0, 0, 4], sizes = [4, 8, 16], strides = [1, 1, 1]} : vector<4x12x20xf32> to vector<4x8x16xf32>
    %12 = vector.shape_cast %11 : vector<4x8x16xf32> to vector<4x128xf32>
    %13 = vector.extract_strided_slice %6 {offsets = [0, 2, 0], sizes = [4, 8, 16], strides = [1, 1, 1]} : vector<4x12x20xf32> to vector<4x8x16xf32>
    %14 = vector.shape_cast %13 : vector<4x8x16xf32> to vector<4x128xf32>
    %15 = vector.extract_strided_slice %6 {offsets = [0, 2, 2], sizes = [4, 8, 16], strides = [1, 1, 1]} : vector<4x12x20xf32> to vector<4x8x16xf32>
    %16 = vector.shape_cast %15 : vector<4x8x16xf32> to vector<4x128xf32>
    %17 = vector.extract_strided_slice %6 {offsets = [0, 2, 4], sizes = [4, 8, 16], strides = [1, 1, 1]} : vector<4x12x20xf32> to vector<4x8x16xf32>
    %18 = vector.shape_cast %17 : vector<4x8x16xf32> to vector<4x128xf32>
    %19 = vector.extract_strided_slice %6 {offsets = [0, 4, 0], sizes = [4, 8, 16], strides = [1, 1, 1]} : vector<4x12x20xf32> to vector<4x8x16xf32>
    %20 = vector.shape_cast %19 : vector<4x8x16xf32> to vector<4x128xf32>
    %21 = vector.extract_strided_slice %6 {offsets = [0, 4, 2], sizes = [4, 8, 16], strides = [1, 1, 1]} : vector<4x12x20xf32> to vector<4x8x16xf32>
    %22 = vector.shape_cast %21 : vector<4x8x16xf32> to vector<4x128xf32>
    %23 = vector.extract_strided_slice %6 {offsets = [0, 4, 4], sizes = [4, 8, 16], strides = [1, 1, 1]} : vector<4x12x20xf32> to vector<4x8x16xf32>
    %24 = vector.shape_cast %23 : vector<4x8x16xf32> to vector<4x128xf32>
    %25 = tpu.concatenate %8, %10, %12, %14, %16, %18, %20, %22, %24 in 0 : vector<4x128xf32>, vector<4x128xf32>, vector<4x128xf32>, vector<4x128xf32>, vector<4x128xf32>, vector<4x128xf32>, vector<4x128xf32>, vector<4x128xf32>, vector<4x128xf32> -> vector<36x128xf32>
    %c0_2 = arith.constant 0 : index
    %c0_3 = arith.constant 0 : index
    %26 = vector.load %arg3[%c0_2, %c0_3] : memref<8x36xf32, #tpu.memory_space<vmem>>, vector<8x36xf32>
    %cst_4 = arith.constant dense<0.000000e+00> : vector<8x128xf32>
    %27 = tpu.matmul %26, %25, %cst_4 {dimension_numbers = #tpu.dot_dimension_numbers<[1], [0], [0], [1], [0, 0, 1, 1], [], []>} : vector<8x36xf32>, vector<36x128xf32>, vector<8x128xf32> -> vector<8x128xf32>
    %c0_5 = arith.constant 0 : index
    %c0_6 = arith.constant 0 : index
    %c0_7 = arith.constant 0 : index
    %28 = vector.load %arg4[%c0_5, %c0_6, %c0_7] : memref<1x8x128xf32, #tpu.memory_space<vmem>>, vector<1x8x128xf32>
    %29 = vector.shape_cast %28 : vector<1x8x128xf32> to vector<8x128xf32>
    %30 = vector.shape_cast %27 : vector<8x128xf32> to vector<1x8x128xf32>
    tpu.vector_store %arg4[%c0_5, %c0_6, %c0_7], %30 {strides = array<i32>} : memref<1x8x128xf32, #tpu.memory_space<vmem>>, vector<1x8x128xf32>,
    return
  }
  func.func @transform_0(%arg0: i32, %arg1: i32) -> (i32, i32, i32, i32) {
    %c0_i32 = arith.constant 0 : i32
    %c0_i32_0 = arith.constant 0 : i32
    %c0_i32_1 = arith.constant 0 : i32
    %c0_i32_2 = arith.constant 0 : i32
    return %arg0, %c0_i32, %c0_i32_0, %c0_i32_1 : i32, i32, i32, i32
  }
  func.func @transform_1(%arg0: i32, %arg1: i32) -> (i32, i32) {
    %c0_i32 = arith.constant 0 : i32
    %c0_i32_0 = arith.constant 0 : i32
    %c0_i32_1 = arith.constant 0 : i32
    return %c0_i32, %c0_i32_0 : i32, i32
  }
  func.func @transform_2(%arg0: i32, %arg1: i32) -> (i32, i32, i32) {
    %c0_i32 = arith.constant 0 : i32
    %c0_i32_0 = arith.constant 0 : i32
    return %arg0, %c0_i32, %arg1 : i32, i32, i32
  }
}

</mosaic_0001>

<bundles_post_ra>
// kernel: tpu_custom_call.1
= control target key start
LH: loop header
LB: loop body
LE: loop exit
PB: predicated region body
PF: predicated region fallthrough
CT: control target
= control target key end

     0   :  { %7 = vsyncpa [#allocation3], 0  ;;  %s2373_s0 = inlined_call_operand.vmem [shape: f32[2,4,20,20], index: 0, kind: input, shape index: {}]   ;;  %s2374_s1 = inlined_call_operand.vmem [shape: f32[8,36], index: 1, kind: input, shape index: {}]   ;;  %s2375_s2 = inlined_call_operand.hbm [shape: f32[2,8,256], index: 2, kind: output, shape index: {}]  }
   0x1   :  { %9 = vsyncpa [#allocation3 + $0x1], 0  ;;  %s1627_s9 = smov 0   ;;  %s1629_s10 = smov 0  }
   0x2   :  { %s1631_s11 = smov 0   ;;  %s1633_s12 = smov 0  }
   0x3   :  { %s1635_s13 = smov 0   ;;  %s1637_s14 = smov 0  }
   0x4   :  { %s1639_s15 = smov 0   ;;  %s1641_s16 = smov 0  }
   0x5 LB: > { %s1252_s17 = sadd.s32 4294967295, %s1599_s16   ;;  %s1253_s18 = sadd.s32 4294967294, %s1599_s16   ;;  %s1599_s16 = sphi %s1641_s16, %s15_s16   ;;  %s1595_s15 = sphi %s1639_s15, %s2384_s15   ;;  %s1591_s14 = sphi %s1637_s14, %s2383_s14   ;;  %s1587_s13 = sphi %s1635_s13, %s2382_s13   ;;  %s1583_s12 = sphi %s1633_s12, %s2381_s12   ;;  %s1579_s11 = sphi %s1631_s11, %s2380_s11   ;;  %s1575_s10 = sphi %s1629_s10, %s2379_s10   ;;  %s1571_s9 = sphi %s1627_s9, %s2378_s9  }
   0x6   : > { %s24_s19 = sadd.s32 1, %s1591_s14  ;;  %s27_s20 = sadd.s32 1, %s1595_s15 }
   0x7   : > { %p25_p0 = scmp.ge.s32.totalorder %s24_s19, 2  ;;  %p93_p1 = scmp.ne.s32.totalorder %s1579_s11, %s1575_s10 }
   0x8   : > { %p94_p2 = scmp.eq.s32.totalorder %s1252_s17, 3  ;;  %p99_p5 = scmp.ne.s32.totalorder %s1575_s10, %s1571_s9 }
   0x9   : > { %s2386_s19 = smov (%p25_p0, %s24_s19), 0  ;;  %s2388_s20 = smov (!%p25_p0, %s27_s20), %s1595_s15 }
   0xa   : > { %s79_s21 = ssub.s32 %s1591_s14, %s2386_s19  ;;  %p1678_p3 = por %p94_p2, %p93_p1 }
   0xb   : > { %p29_p4 = scmp.ge.s32.totalorder %s2388_s20, 2  ;;  %p100_p6 = scmp.eq.s32.totalorder %s1253_s18, 3 }
   0xc   : > { %p1256_p7 = scmp.ge.s32.totalorder %s1599_s16, 1  ;;  %p129_p9 = scmp.lt.s32.totalorder %s1599_s16, 5 }
   0xd   : > { %s2390_s20 = smov (%p29_p4, %s2388_s20), 0  ;;  %p1687_p8 = por %p100_p6, %p99_p5 }
   0xe   : > { %s78_s24 = ssub.s32 %s1595_s15, %s2390_s20  ;;  %s83_s25 = sadd.s32 1, %s1579_s11 }
   0xf   : > { %s80_s26 = sor.u32 %s79_s21, %s78_s24  ;;  %p130_p10 = pnand %p1256_p7, %p129_p9 }
  0x10   : > { %p81_p11 = scmp.eq.s32.totalorder %s80_s26, 0  ;;  %p151_p12 = scmp.lt.s32.totalorder (!%p130_p10), %s1587_s13, 1 }
  0x11   : > { %133 = sbr.rel (%p130_p10) target bundleno = 519 (0x207), region = 28  ;;  %s1259_s30 = sshll.u32 (!%p130_p10), %s1583_s12, 3 }
  0x12   : > { %s1696_s27 = scalar_select %p81_p11, %s1579_s11, %s83_s25  }
  0x13   : > { %s1603_s7 = smov (!%p130_p10), 126   ;;  %s1604_s8 = smov (!%p130_p10), 124  }
  0x14   : > { %s1605_s17 = smov (!%p130_p10), 64   ;;  %s1606_s18 = smov (!%p130_p10), 32  }
  0x15   : > { %s1607_s21 = smov (!%p130_p10), 96   ;;  %s1608_s24 = smov (!%p130_p10), 16  }
  0x16   : > { %s152_s28 = scalar_select %p151_p12, %s1587_s13, 1  ;;  %v1601_v0 = vmov 1983009808   ;;  %v1602_v2 = vmov 1934713408   ;;  %vm801_vm0 = vcmask 1043456  }
  0x17   : > { %v180_v1 = vunpack.c.l.s4 %v1601_v0  ;;  %v204_v3 = vunpack.c.l.s4 %v1602_v2  ;;  %vm175_vm1 = vcmask 1047556   ;;  %vm487_vm2 = vcmask 1045504   ;;  %s1609_s25 = smov 48   ;;  %s1610_s26 = smov 112  }
  0x18   : > { %s1267_s29 = smul.u32 96, %s152_s28  ;;  %s1611_s28 = smov 80   ;;  %vm259_vm3 = vcmask 130048   ;;  %vm261_vm4 = vcmask 261120   ;;  %vm263_vm5 = vcmask 392192   ;;  %vm265_vm6 = vcmask 523264  }
  0x19   : > { %v1718_v14 = vunpack.c.0.s8 %v180_v1  ;;  %v1722_v16 = vunpack.c.0.s8 %v204_v3  ;;  %vm267_vm7 = vcmask 654336   ;;  %vm269_vm8 = vcmask 785408   ;;  %s1263_s3 = sshll.u32 %s1587_s13, 1  ;;  %s148_s4 = sand.u32 1, %s1575_s10  }
  0x1a   : > { %s155_s5 = scalar_lea.vmem %s2373_s0, %s1267_s29  ;;  %vm271_vm9 = vcmask 916480   ;;  %vm1132_vm10 = vcmask 293888  }
  0x1b   : > { %s1704_s6 = scalar_lea.vmem %s155_s5, %s1259_s30  ;;  %s1171_s5 = sadd.s32 %s1583_s12, %s1263_s3 }
  0x1c   : > { %v158_v4 = vld [vmem:[%s1704_s6] sm:$0xff]  ;;  %v160_v5 = vld [vmem:[%s1704_s6 + $0x18] sm:$0xff]  ;;  %v164_v6 = vld [vmem:[%s1704_s6 + $0x48] sm:$0xff]  ;;  %s1525_s30 = scalar_lea.hbm %s2375_s2, 32 }
  0x1d   : > { %v1709_v7 = vmax.f32 %v158_v4, 0.0  ;;  %v1711_v8 = vmax.f32 %v160_v5, 0.0  ;;  %v165_v9 = vld [vmem:[%s1704_s6 + $0x50] sm:$0xf]  ;;  %v1714_v10 = vmax.f32 %v164_v6, 0.0 }
  0x1e   : > { %v162_v11 = vld [vmem:[%s1704_s6 + $0x30] sm:$0xff]  ;;  %v173_v12 = vmax.f32 %v165_v9, 0.0  ;;  %v161_v13 = vld [vmem:[%s1704_s6 + $0x20] sm:$0xf]  ;;  %v163_v48 = vld [vmem:[%s1704_s6 + $0x38] sm:$0xf] }
  0x1f   : > { %v1720_v15 = vmax.f32 %v162_v11, 0.0  ;;  %v1350_v17 = vpack.i.bf16 %v1711_v8, %v1709_v7  ;;  %v187_v18 = vrot.slane %v1714_v10, 4  ;;  %v169_v19 = vmax.f32 %v161_v13, 0.0 }
  0x20   : > { %v189_v20 = vrot.slane %v1711_v8, 4  ;;  %v498_v21 = vrot.slane %v173_v12, 2  ;;  %v812_v22 = vrot.slane %v173_v12, 4  ;;  %v177_v23 = vrot.slane %v1709_v7, 4 }
  0x21   : > { %v174_v24 = vrot.slane %v1720_v15, 4  ;;  %1351 = vrot.lane.b32.xlu1 %v1350_v17, %s1603_s7  ;;  %v806_v25 = vrot.slane %v169_v19, 4  ;;  %v188_v27 = vsel %vm175_vm1, %v187_v18, %v1711_v8  ;;  %v491_v28 = vrot.slane %v1711_v8, 2  ;;  %v159_v17 = vld [vmem:[%s1704_s6 + $0x8] sm:$0xf]  ;;  %s1257_s6 = sshll.u32 %s148_s4, 3 }
  0x22   : > { %v190_v26 = vsel %vm175_vm1, %v1714_v10, %v189_v20  ;;  %v813_v29 = vsel %vm801_vm0, %v187_v18, %v812_v22  ;;  %v178_v30 = vsel %vm175_vm1, %v1720_v15, %v177_v23  ;;  %v194_v40 = vperm.slane %v188_v27, %v1718_v14 }
  0x23   : > { %v198_v31 = vperm.slane %v190_v26, %v1718_v14  ;;  %v176_v32 = vsel %vm175_vm1, %v174_v24, %v1709_v7  ;;  %1018 = vrot.lane.b32.xlu0 %v813_v29, %s1604_s8  ;;  %v830_v33 = vrot.slane %v813_v29, 4  ;;  %v1746_v34 = vsel %vm801_vm0, %v189_v20, %v806_v25 }
  0x24   : > { %v186_v35 = vperm.slane %v178_v30, %v1718_v14  ;;  %v182_v36 = vperm.slane %v176_v32, %v1718_v14  ;;  %v1355_v37 = vpack.i.bf16 %v1746_v34, %v813_v29  ;;  %v832_v38 = vrot.slane %v1746_v34, 4 }
  0x25   : > { %v211_v39 = vrot.slane %v198_v31, 4  ;;  %v1755_v41 = vsel %vm175_vm1, %v830_v33, %v1746_v34  ;;  %v492_v44 = vrot.slane %v169_v19, 2  ;;  %v497_v47 = vrot.slane %v1714_v10, 2 }
  0x26   : > { %v201_v42 = vrot.slane %v182_v36, 4  ;;  %v213_v43 = vrot.slane %v186_v35, 4  ;;  %1356 = vrot.lane.b32.xlu2 %v1355_v37, %s1603_s7  ;;  %v1759_v45 = vsel %vm175_vm1, %v813_v29, %v832_v38  ;;  %v199_v56 = vrot.slane %v194_v40, 4 }
  0x27   : > { %v212_v46 = vsel %vm175_vm1, %v211_v39, %v186_v35  ;;  %v493_v53 = vsel %vm487_vm2, %v491_v28, %v492_v44  ;;  %v499_v54 = vsel %vm487_vm2, %v497_v47, %v498_v21  ;;  %v171_v57 = vmax.f32 %v163_v48, 0.0 }
  0x28   : > { %v218_v49 = vperm.slane %v212_v46, %v1722_v16  ;;  %v202_v50 = vsel %vm175_vm1, %v194_v40, %v201_v42  ;;  %v214_v51 = vsel %vm175_vm1, %v198_v31, %v213_v43  ;;  %v518_v55 = vrot.slane %v493_v53, 4 }
  0x29   : > { %v210_v52 = vperm.slane %v202_v50, %v1722_v16  ;;  %v222_v58 = vperm.slane %v214_v51, %v1722_v16  ;;  %v516_v59 = vrot.slane %v499_v54, 4  ;;  %v200_v61 = vsel %vm175_vm1, %v199_v56, %v182_v36 }
  0x2a   : > { %244 = vrot.lane.b32.xlu1 %v218_v49, %s1605_s17  ;;  %v1774_v60 = vsel %vm175_vm1, %v499_v54, %v518_v55  ;;  %v809_v62 = vrot.slane %v171_v57, 4  ;;  %v1779_v0 = vperm.slane %v200_v61, %v1722_v16  ;;  %v1360_v1 = vpack.i.bf16 %v493_v53, %v499_v54 }
  0x2b   : > { %236 = vrot.lane.b32.xlu0 %v210_v52, %s1606_s18  ;;  %v517_v63 = vsel %vm175_vm1, %v516_v59, %v493_v53  ;;  %v225_v6 = vrot.slane %v210_v52, 4  ;;  %v229_v9 = vrot.slane %v222_v58, 4  ;;  %v227_v12 = vrot.slane %v218_v49, 4 }
  0x2c   : > { %v223_v2 = vrot.slane %v1779_v0, 4  ;;  %v1784_v3 = vsel %vm801_vm0, %v174_v24, %v809_v62  ;;  %v494_v19 = vrot.slane %v1720_v15, 2  ;;  %v495_v20 = vrot.slane %v171_v57, 2 }
  0x2d   : > { %v1365_v5 = vpack.i.bf16 %v499_v54, %v1784_v3  ;;  %v226_v11 = vsel %vm175_vm1, 0.0, %v225_v6  ;;  %v230_v13 = vsel %vm175_vm1, 0.0, %v229_v9  ;;  %v228_v18 = vsel %vm175_vm1, 0.0, %v227_v12 }
  0x2e   : > { %252 = vrot.lane.b32.xlu2 %v222_v58, %s1607_s21  ;;  %v224_v4 = vsel %vm175_vm1, 0.0, %v223_v2  ;;  %v167_v21 = vmax.f32 %v159_v17, 0.0  ;;  %v496_v22 = vsel %vm487_vm2, %v494_v19, %v495_v20  ;;  %v488_v28 = vrot.slane %v1709_v7, 2 }
  0x2f   : > { %v1370_v25 = vpack.i.bf16 %v1714_v10, %v496_v22  ;;  %v1380_v30 = vpack.i.bf16 %v496_v22, %v493_v53  ;;  %v1395_v33 = vpack.i.bf16 %v1709_v7, %v1720_v15  ;;  %v837_v36 = vperm.slane %v1755_v41, %v1718_v14 }
  0x30   : > { %v803_v24 = vrot.slane %v167_v21, 4  ;;  %v489_v27 = vrot.slane %v167_v21, 2  ;;  %v523_v38 = vperm.slane %v517_v63, %v1718_v14  ;;  %v527_v55 = vperm.slane %v1774_v60, %v1718_v14 }
  0x31   : > { %v841_v57 = vperm.slane %v1759_v45, %v1718_v14 }
  0x32   : > { %1361 = vrot.lane.b32.xlu1 %v1360_v1, %s1604_s8  ;;  %v804_v26 = vsel %vm801_vm0, %v177_v23, %v803_v24  ;;  %v490_v31 = vsel %vm487_vm2, %v488_v28, %v489_v27  ;;  %v528_v43 = vrot.slane %v523_v38, 4  ;;  %v540_v9 = vrot.slane %v527_v55, 4 }
  0x33   : > { %232 = vrot.lane.b32.xlu0 %v224_v4, %s1608_s24  ;;  %v1375_v29 = vpack.i.bf16 %v1714_v10, %v804_v26  ;;  %v1390_v32 = vpack.i.bf16 %v490_v31, %v1720_v15  ;;  %v1385_v23 = vpack.i.bf16 %v1711_v8, %v490_v31  ;;  %v818_v10 = vrot.slane %v1784_v3, 4 }
  0x34   : > { %v842_v15 = vrot.slane %v837_v36, 4  ;;  %v820_v42 = vrot.slane %v804_v26, 4  ;;  %v506_v52 = vrot.slane %v490_v31, 4 }
  0x35   : > { %v819_v35 = vsel %vm175_vm1, %v818_v10, %v804_v26 }
  0x36   : > { %1366 = vrot.lane.b32.xlu2 %v1365_v5, %s1603_s7  ;;  %v825_v8 = vperm.slane %v819_v35, %v1718_v14  ;;  %v821_v51 = vsel %vm175_vm1, %v1784_v3, %v820_v42  ;;  %v507_v60 = vsel %vm175_vm1, %v496_v22, %v506_v52 }
  0x37   : > { %v829_v62 = vperm.slane %v821_v51, %v1718_v14  ;;  %v515_v45 = vperm.slane %v507_v60, %v1718_v14 }
  0x38   : > { %v844_v39 = vrot.slane %v825_v8, 4  ;;  %v843_v47 = vsel %vm175_vm1, %v842_v15, %v825_v8 }
  0x39   : > { %v1838_v48 = vperm.slane %v843_v47, %v1722_v16  ;;  %v541_v12 = vsel %vm175_vm1, %v540_v9, %v515_v45  ;;  %v856_v28 = vrot.slane %v829_v62, 4 }
  0x3a   : > { %240 = vrot.lane.b32.xlu1 %v226_v11, %s1609_s25  ;;  %v845_v50 = vsel %vm175_vm1, %v837_v36, %v844_v39  ;;  %v854_v11 = vrot.slane %v841_v57, 4 }
  0x3b   : > { %256 = vrot.lane.b32.xlu0 %v230_v13, %s1610_s26  ;;  %v853_v54 = vperm.slane %v845_v50, %v1722_v16  ;;  %v866_v58 = vrot.slane %v1838_v48, 4  ;;  %v547_v13 = vperm.slane %v541_v12, %v1722_v16 }
  0x3c   : > { %v855_v17 = vsel %vm175_vm1, %v854_v11, %v829_v62 }
  0x3d   : > { %v868_v61 = vrot.slane %v853_v54, 4  ;;  %v867_v1 = vsel %vm175_vm1, 0.0, %v866_v58  ;;  %v556_v19 = vrot.slane %v547_v13, 4 }
  0x3e   : > { %248 = vrot.lane.b32.xlu2 %v228_v18, %s1611_s28  ;;  %v861_v18 = vperm.slane %v855_v17, %v1722_v16 }
  0x40   : > { %v870_v20 = vrot.slane %v861_v18, 4  ;;  %v1415_v47 = vpack.i.bf16 %v547_v13, %v861_v18 }
  0x42   : > { %1016 = vrot.lane.b32.xlu1 %v1784_v3, %s1604_s8  ;;  %v869_v3 = vsel %vm175_vm1, 0.0, %v868_v61  ;;  %v871_v24 = vsel %vm175_vm1, 0.0, %v870_v20 }
  0x43   : > { %1014 = vrot.lane.b32.xlu0 %v1746_v34, %s1604_s8  ;;  %v504_v34 = vrot.slane %v496_v22, 4  ;;  %v557_v22 = vsel %vm175_vm1, 0.0, %v556_v19 }
  0x44   : > { %v1420_v27 = vpack.i.bf16 %v557_v22, %v871_v24 }
  0x45   : > { %v505_v37 = vsel %vm175_vm1, %v504_v34, %v490_v31 }
  0x46   : > { %1371 = vrot.lane.b32.xlu2 %v1370_v25, %s1604_s8  ;;  %v511_v7 = vperm.slane %v505_v37, %v1718_v14  ;;  %v542_v25 = vrot.slane %v515_v45, 4 }
  0x48   : > { %v530_v44 = vrot.slane %v511_v7, 4  ;;  %v529_v46 = vsel %vm175_vm1, %v528_v43, %v511_v7 }
  0x49   : > { %v1835_v41 = vperm.slane %v529_v46, %v1722_v16 }
  0x4a   : > { %1012 = vrot.lane.b32.xlu1 %v804_v26, %s1604_s8  ;;  %v531_v49 = vsel %vm175_vm1, %v523_v38, %v530_v44 }
  0x4b   : > { %1376 = vrot.lane.b32.xlu0 %v1375_v29, %s1603_s7  ;;  %v539_v53 = vperm.slane %v531_v49, %v1722_v16  ;;  %v552_v56 = vrot.slane %v1835_v41, 4 }
  0x4d   : > { %v554_v59 = vrot.slane %v539_v53, 4  ;;  %v553_v63 = vsel %vm175_vm1, 0.0, %v552_v56  ;;  %v1405_v21 = vpack.i.bf16 %v539_v53, %v853_v54 }
  0x4e   : > { %1381 = vrot.lane.b32.xlu2 %v1380_v30, %s1603_s7  ;;  %v1400_v5 = vpack.i.bf16 %v553_v63, %v867_v1  ;;  %v543_v30 = vsel %vm175_vm1, %v527_v55, %v542_v25 }
  0x4f   : > { %v555_v2 = vsel %vm175_vm1, 0.0, %v554_v59 }
  0x50   : > { %v1410_v6 = vpack.i.bf16 %v555_v2, %v869_v3 }
  0x52   : > { %1391 = vrot.lane.b32.xlu1 %v1390_v32, %s1603_s7  ;;  %v551_v32 = vperm.slane %v543_v30, %v1722_v16  ;;  %s1264_s7 = sshll.u32 %s1171_s5, 3 }
  0x53   : > { %1386 = vrot.lane.b32.xlu0 %v1385_v23, %s1604_s8  ;;  %v857_v23 = vsel %vm175_vm1, %v841_v57, %v856_v28 }
  0x54   : > { %v558_v10 = vrot.slane %v551_v32, 4 }
  0x56   : > { %1396 = vrot.lane.b32.xlu2 %v1395_v33, %s1604_s8  ;;  %v865_v33 = vperm.slane %v857_v23, %v1722_v16  ;;  %v559_v36 = vsel %vm175_vm1, 0.0, %v558_v10 }
  0x58   : > { %v872_v34 = vrot.slane %v865_v33, 4  ;;  %v1425_v35 = vpack.i.bf16 %v551_v32, %v865_v33 }
  0x5a   : > { %1411 = vrot.lane.b32.xlu1 %v1410_v6, %s1609_s25  ;;  %v873_v37 = vsel %vm175_vm1, 0.0, %v872_v34 }
  0x5b   : > { %1401 = vrot.lane.b32.xlu0 %v1400_v5, %s1608_s24  ;;  %v1430_v38 = vpack.i.bf16 %v559_v36, %v873_v37 }
  0x5e   : > { %1416 = vrot.lane.b32.xlu2 %v1415_v47, %s1605_s17 }
  0x62   : > { %1421 = vrot.lane.b32.xlu1 %v1420_v27, %s1611_s28 }
  0x63   : > { %1406 = vrot.lane.b32.xlu0 %v1405_v21, %s1606_s18 }
  0x6a   : > { %1431 = vrot.lane.b32.xlu1 %v1430_v38, %s1610_s26 }
  0x6b   : > { %1426 = vrot.lane.b32.xlu0 %v1425_v35, %s1607_s21 }
  0x80   : > { %v1830_v40 = vpop.permute.xlu2 %1356 }
  0x81   : > { %v1359_v59 = vunpack.i.h.bf16 %v1830_v40  ;;  %v1358_v61 = vunpack.i.l.bf16 %v1830_v40 }
  0x83   : > { %v935_v3 = vrot.slane %v1359_v59, 4  ;;  %v933_v60 = vrot.slane %v1358_v61, 4 }
  0x85   : > { %v934_v18 = vsel %vm175_vm1, %v933_v60, %v1359_v59  ;;  %v936_v19 = vsel %vm175_vm1, %v1358_v61, %v935_v3 }
  0x86   : > { %v1935_v33 = vperm.slane %v934_v18, %v1718_v14  ;;  %v1938_v34 = vperm.slane %v936_v19, %v1718_v14 }
  0x88   : > { %v253_v4 = vpop.permute.xlu2 %252 }
  0x90   : > { %v1869_v29 = vpop.permute.xlu2 %1366 }
  0x91   : > { %v1368_v12 = vunpack.i.l.bf16 %v1869_v29  ;;  %v1369_v35 = vunpack.i.h.bf16 %v1869_v29 }
  0x93   : > { %v1867_v26 = vpop.permute.xlu1 %1351  ;;  %v921_v10 = vrot.slane %v1368_v12, 4 }
  0x94   : > { %v1353_v28 = vunpack.i.l.bf16 %v1867_v26 }
  0x95   : > { %v1873_v31 = vpop.permute.xlu0 %1018 }
  0x98   : > { %v249_v15 = vpop.permute.xlu2 %248 }
  0x9c   : > { %v245_v8 = vpop.permute.xlu1 %244 }
  0x9d   : > { %v237_v7 = vpop.permute.xlu0 %236 }
  0xa0   : > { %v1888_v46 = vpop.permute.xlu2 %1371 }
  0xa1   : > { %v1374_v30 = vunpack.i.h.bf16 %v1888_v46  ;;  %v1373_v32 = vunpack.i.l.bf16 %v1888_v46 }
  0xa3   : > { %v710_v46 = vrot.slane %v1373_v32, 4 }
  0xa4   : > { %v1883_v39 = vpop.permute.xlu1 %1361 }
  0xa5   : > { %v233_v42 = vpop.permute.xlu0 %232  ;;  %v1364_v6 = vunpack.i.h.bf16 %v1883_v39 }
  0xa6   : > { %v260_v43 = vsel %vm259_vm3, %v1779_v0, %v233_v42  ;;  %v291_v42 = vrot.slane %v1353_v28, 4 }
  0xa7   : > { %v262_v44 = vsel %vm261_vm4, %v260_v43, %v237_v7  ;;  %v724_v22 = vrot.slane %v1364_v6, 4  ;;  %v1036_v43 = vrot.slane %v1873_v31, 4 }
  0xa8   : > { %v1898_v55 = vpop.permute.xlu2 %1381 }
  0xa9   : > { %v1384_v59 = vunpack.i.h.bf16 %v1898_v55 }
  0xac   : > { %v241_v49 = vpop.permute.xlu1 %240 }
  0xad   : > { %v264_v50 = vsel %vm263_vm5, %v262_v44, %v241_v49  ;;  %v257_v52 = vpop.permute.xlu0 %256  ;;  %v404_v44 = vrot.slane %v1374_v30, 4 }
  0xae   : > { %v266_v51 = vsel %vm265_vm6, %v264_v50, %v245_v8 }
  0xaf   : > { %v268_v0 = vsel %vm267_vm7, %v266_v51, %v249_v15 }
  0xb0   : > { %v270_v53 = vsel %vm269_vm8, %v268_v0, %v253_v4  ;;  %v1397_v63 = vpop.permute.xlu2 %1396  ;;  %v1363_v4 = vunpack.i.l.bf16 %v1883_v39 }
  0xb1   : > { %v1896_v54 = vsel %vm271_vm9, %v270_v53, %v257_v52  ;;  %v1398_v9 = vunpack.i.l.bf16 %v1397_v63  ;;  %v1399_v24 = vunpack.i.h.bf16 %v1397_v63 }
  0xb2   : > { %v722_v20 = vrot.slane %v1363_v4, 4  ;;  %v725_v8 = vsel %vm175_vm1, %v1363_v4, %v724_v22 }
  0xb3   : > { %v392_v25 = vrot.slane %v1398_v9, 4  ;;  %v394_v7 = vrot.slane %v1399_v24, 4  ;;  %v1961_v53 = vperm.slane %v725_v8, %v1718_v14 }
  0xb4   : > { %v1900_v56 = vpop.permute.xlu1 %1016  ;;  %v723_v36 = vsel %vm175_vm1, %v722_v20, %v1364_v6 }
  0xb5   : > { %v1902_v57 = vpop.permute.xlu0 %1014  ;;  %v393_v15 = vsel %vm175_vm1, %v392_v25, %v1399_v24  ;;  %v1024_v49 = vrot.slane %v1900_v56, 4  ;;  %v1958_v0 = vperm.slane %v723_v36, %v1718_v14  ;;  %v395_v61 = vsel %vm175_vm1, %v1398_v9, %v394_v7 }
  0xb6   : > { %v1038_v58 = vrot.slane %v1902_v57, 4  ;;  %v1995_v24 = vperm.slane %v395_v61, %v1718_v14  ;;  %v1037_v8 = vsel %vm175_vm1, %v1036_v43, %v1902_v57 }
  0xb8   : > { %v1039_v62 = vsel %vm175_vm1, %v1873_v31, %v1038_v58  ;;  %v1967_v31 = vperm.slane %v393_v15, %v1718_v14 }
  0xb9   : > { %v1910_v1 = vperm.slane %v1039_v62, %v1718_v14 }
  0xba   : > { %v418_v9 = vrot.slane %v1967_v31, 4 }
  0xbb   : > { %v1060_v13 = vrot.slane %v1910_v1, 4 }
  0xbc   : > { %v1013_v2 = vpop.permute.xlu1 %1012 }
  0xbd   : > { %v1026_v5 = vrot.slane %v1013_v2, 4  ;;  %v1914_v45 = vpop.permute.xlu0 %1376 }
  0xbe   : > { %v1378_v11 = vunpack.i.l.bf16 %v1914_v45 }
  0xbf   : > { %v1027_v40 = vsel %vm175_vm1, %v1900_v56, %v1026_v5  ;;  %v1383_v56 = vunpack.i.l.bf16 %v1898_v55  ;;  %v1025_v5 = vsel %vm175_vm1, %v1024_v49, %v1013_v2  ;;  %v1354_v49 = vunpack.i.h.bf16 %v1867_v26 }
  0xc0   : > { %v1922_v17 = vperm.slane %v1027_v40, %v1718_v14  ;;  %v923_v21 = vrot.slane %v1378_v11, 4  ;;  %v922_v38 = vsel %vm175_vm1, %v921_v10, %v1378_v11  ;;  %v1992_v22 = vperm.slane %v1025_v5, %v1718_v14 }
  0xc1   : > { %v1964_v58 = vperm.slane %v922_v38, %v1718_v14  ;;  %v1379_v38 = vunpack.i.h.bf16 %v1914_v45 }
  0xc2   : > { %v1061_v27 = vsel %vm175_vm1, %v1060_v13, %v1922_v17  ;;  %v924_v37 = vsel %vm175_vm1, %v1368_v12, %v923_v21  ;;  %v1062_v5 = vrot.slane %v1922_v17, 4 }
  0xc3   : > { %v1932_v23 = vperm.slane %v1061_v27, %v1722_v16  ;;  %v1955_v50 = vperm.slane %v924_v37, %v1718_v14  ;;  %v947_v12 = vrot.slane %v1964_v58, 4  ;;  %v621_v37 = vrot.slane %v1383_v56, 4 }
  0xc4   : > { %v1951_v47 = vpop.permute.xlu1 %1391 }
  0xc5   : > { %1093 = vrot.lane.b32.xlu0 %v1932_v23, %s1605_s17  ;;  %v1387_v39 = vpop.permute.xlu0 %1386  ;;  %v1394_v62 = vunpack.i.h.bf16 %v1951_v47  ;;  %v959_v6 = vrot.slane %v1955_v50, 4  ;;  %v1393_v19 = vunpack.i.l.bf16 %v1951_v47 }
  0xc6   : > { %v1389_v51 = vunpack.i.h.bf16 %v1387_v39  ;;  %v1388_v52 = vunpack.i.l.bf16 %v1387_v39 }
  0xc7   : > { %v609_v25 = vrot.slane %v1394_v62, 4  ;;  %v960_v36 = vsel %vm175_vm1, %v1938_v34, %v959_v6  ;;  %v289_v15 = vrot.slane %v1393_v19, 4 }
  0xc8   : > { %v405_v63 = vsel %vm175_vm1, %v404_v44, %v1389_v51  ;;  %v406_v3 = vrot.slane %v1389_v51, 4  ;;  %v711_v60 = vsel %vm175_vm1, %v710_v46, %v1388_v52  ;;  %v712_v4 = vrot.slane %v1388_v52, 4 }
  0xc9   : > { %v411_v40 = vperm.slane %v405_v63, %v1718_v14  ;;  %v1979_v11 = vperm.slane %v711_v60, %v1718_v14  ;;  %v948_v46 = vsel %vm175_vm1, %v1935_v33, %v947_v12  ;;  %v610_v57 = vsel %vm175_vm1, %v1384_v59, %v609_v25 }
  0xca   : > { %v407_v13 = vsel %vm175_vm1, %v1374_v30, %v406_v3  ;;  %v713_v18 = vsel %vm175_vm1, %v1373_v32, %v712_v4  ;;  %v2027_v47 = vperm.slane %v960_v36, %v1722_v16  ;;  %v607_v51 = vrot.slane %v1384_v59, 4 }
  0xcb   : > { %v1987_v20 = vperm.slane %v407_v13, %v1718_v14  ;;  %v721_v2 = vperm.slane %v713_v18, %v1718_v14  ;;  %v736_v21 = vrot.slane %v1979_v11, 4  ;;  %v419_v27 = vsel %vm175_vm1, %v411_v40, %v418_v9 }
  0xcc   : > { %v1999_v32 = vperm.slane %v419_v27, %v1722_v16  ;;  %v1050_v52 = vrot.slane %v1992_v22, 4  ;;  %v2035_v63 = vperm.slane %v1037_v8, %v1718_v14  ;;  %v292_v3 = vsel %vm175_vm1, %v1393_v19, %v291_v42 }
  0xcd   : > { %v748_v30 = vrot.slane %v721_v2, 4  ;;  %v428_v10 = vrot.slane %v1987_v20, 4  ;;  %v737_v7 = vsel %vm175_vm1, %v1958_v0, %v736_v21  ;;  %v416_v60 = vrot.slane %v411_v40, 4 }
  0xce   : > { %453 = vrot.lane.b32.xlu1 %v1999_v32, %s1606_s18  ;;  %v2032_v61 = vperm.slane %v737_v7, %v1722_v16  ;;  %v618_v59 = vperm.slane %v610_v57, %v1718_v14  ;;  %v290_v6 = vsel %vm175_vm1, %v289_v15, %v1353_v28  ;;  %v2048_v12 = vperm.slane %v948_v46, %v1722_v16 }
  0xcf   : > { %v429_v39 = vsel %vm175_vm1, %v428_v10, %v1995_v24  ;;  %v749_v44 = vsel %vm175_vm1, %v1961_v53, %v748_v30  ;;  %v957_v42 = vrot.slane %v1938_v34, 4  ;;  %v746_v40 = vrot.slane %v1961_v53, 4 }
  0xd0   : > { %v2021_v45 = vperm.slane %v429_v39, %v1722_v16  ;;  %v2024_v43 = vperm.slane %v749_v44, %v1722_v16  ;;  %v622_v9 = vsel %vm175_vm1, %v1369_v35, %v621_v37  ;;  %v301_v13 = vrot.slane %v1379_v38, 4 }
  0xd1   : > { %v608_v17 = vsel %vm175_vm1, %v607_v51, %v1394_v62  ;;  %v300_v26 = vperm.slane %v292_v3, %v1718_v14  ;;  %v1435_v28 = vpack.i.bf16 %v2032_v61, %v2048_v12  ;;  %v1051_v18 = vsel %vm175_vm1, %v2035_v63, %v1050_v52 }
  0xd2   : > { %461 = vrot.lane.b32.xlu2 %v2021_v45, %s1605_s17  ;;  %v1450_v4 = vpack.i.bf16 %v2024_v43, %v2027_v47  ;;  %v303_v34 = vrot.slane %v1354_v49, 4  ;;  %v296_v53 = vperm.slane %v290_v6, %v1718_v14  ;;  %v747_v19 = vsel %vm175_vm1, %v746_v40, %v721_v2 }
  0xd3   : > { %v417_v21 = vsel %vm175_vm1, %v416_v60, %v1967_v31  ;;  %v619_v25 = vrot.slane %v1369_v35, 4  ;;  %v630_v62 = vperm.slane %v622_v9, %v1718_v14  ;;  %v645_v27 = vrot.slane %v618_v59, 4 }
  0xd4   : > { %1451 = vrot.lane.b32.xlu0 %v1450_v4, %s1607_s21  ;;  %v1063_v30 = vsel %vm175_vm1, %v1910_v1, %v1062_v5  ;;  %v304_v10 = vsel %vm175_vm1, %v1379_v38, %v303_v34  ;;  %v614_v36 = vperm.slane %v608_v17, %v1718_v14  ;;  %v2075_v2 = vperm.slane %v1051_v18, %v1722_v16 }
  0xd5   : > { %v958_v31 = vsel %vm175_vm1, %v957_v42, %v1955_v50  ;;  %v302_v29 = vsel %vm175_vm1, %v301_v13, %v1354_v49  ;;  %v327_v35 = vrot.slane %v300_v26, 4  ;;  %v2081_v37 = vperm.slane %v747_v19, %v1722_v16 }
  0xd6   : > { %1436 = vrot.lane.b32.xlu1 %v1435_v28, %s1606_s18  ;;  %v2084_v8 = vperm.slane %v417_v21, %v1722_v16  ;;  %v734_v1 = vrot.slane %v1958_v0, 4  ;;  %v315_v38 = vrot.slane %v296_v53, 4  ;;  %v2090_v7 = vperm.slane %v1063_v30, %v1722_v16 }
  0xd7   : > { %v620_v50 = vsel %vm175_vm1, %v619_v25, %v1383_v56  ;;  %v312_v15 = vperm.slane %v304_v10, %v1718_v14  ;;  %v2097_v39 = vperm.slane %v958_v31, %v1722_v16  ;;  %v646_v44 = vsel %vm175_vm1, %v630_v62, %v645_v27 }
  0xd8   : > { %v945_v0 = vrot.slane %v1935_v33, 4  ;;  %v308_v46 = vperm.slane %v302_v29, %v1718_v14  ;;  %v633_v57 = vrot.slane %v614_v36, 4  ;;  %v735_v55 = vsel %vm175_vm1, %v734_v1, %v1979_v11 }
  0xd9   : > { %v1440_v56 = vpack.i.bf16 %v2081_v37, %v2097_v39  ;;  %v440_v49 = vrot.slane %v2084_v8, 4  ;;  %v328_v51 = vsel %vm175_vm1, %v312_v15, %v327_v35  ;;  %v626_v52 = vperm.slane %v620_v50, %v1718_v14 }
  0xda   : > { %1085 = vrot.lane.b32.xlu2 %v2075_v2, %s1606_s18  ;;  %v2112_v33 = vperm.slane %v646_v44, %v1722_v16  ;;  %v316_v3 = vsel %vm175_vm1, %v308_v46, %v315_v38  ;;  %v946_v60 = vsel %vm175_vm1, %v945_v0, %v1964_v58  ;;  %v643_v4 = vrot.slane %v630_v62, 4 }
  0xdb   : > { %v2119_v11 = vperm.slane %v735_v55, %v1722_v16  ;;  %v325_v5 = vrot.slane %v312_v15, 4  ;;  %v2122_v6 = vperm.slane %v328_v51, %v1722_v16  ;;  %v634_v14 = vsel %vm175_vm1, %v626_v52, %v633_v57 }
  0xdc   : > { %1101 = vrot.lane.b32.xlu0 %v2090_v7, %s1607_s21  ;;  %v441_v42 = vsel %vm175_vm1, 0.0, %v440_v49  ;;  %v324_v40 = vperm.slane %v316_v3, %v1722_v16  ;;  %v644_v9 = vsel %vm175_vm1, %v643_v4, %v618_v59  ;;  %v2129_v58 = vperm.slane %v946_v60, %v1722_v16 }
  0xdd   : > { %v313_v13 = vrot.slane %v308_v46, 4  ;;  %v1460_v17 = vpack.i.bf16 %v2122_v6, %v2112_v33  ;;  %v642_v28 = vperm.slane %v634_v14, %v1722_v16  ;;  %v326_v18 = vsel %vm175_vm1, %v325_v5, %v300_v26 }
  0xde   : > { %1441 = vrot.lane.b32.xlu1 %v1440_v56, %s1605_s17  ;;  %v758_v34 = vrot.slane %v2119_v11, 4  ;;  %v631_v19 = vrot.slane %v626_v52, 4  ;;  %v650_v59 = vperm.slane %v644_v9, %v1722_v16  ;;  %v969_v62 = vrot.slane %v2129_v58, 4  ;;  %v1412_v9 = vpop.permute.xlu1 %1411 }
  0xdf   : > { %v314_v21 = vsel %vm175_vm1, %v313_v13, %v296_v53  ;;  %v1445_v25 = vpack.i.bf16 %v324_v40, %v642_v28  ;;  %v332_v27 = vperm.slane %v326_v18, %v1722_v16  ;;  %v444_v1 = vrot.slane %v2021_v45, 4 }
  0xe0   : > { %v632_v30 = vsel %vm175_vm1, %v631_v19, %v614_v36  ;;  %v759_v26 = vsel %vm175_vm1, 0.0, %v758_v34  ;;  %v2146_v10 = vperm.slane %v314_v21, %v1722_v16  ;;  %v970_v29 = vsel %vm175_vm1, 0.0, %v969_v62 }
  0xe1   : > { %v1455_v31 = vpack.i.bf16 %v332_v27, %v650_v59  ;;  %v2150_v35 = vperm.slane %v632_v30, %v1722_v16  ;;  %v1465_v53 = vpack.i.bf16 %v759_v26, %v970_v29  ;;  %v1048_v38 = vrot.slane %v2035_v63, 4 }
  0xe2   : > { %449 = vrot.lane.b32.xlu2 %v441_v42, %s1608_s24  ;;  %v337_v36 = vrot.slane %v2146_v10, 4  ;;  %v442_v50 = vrot.slane %v1999_v32, 4  ;;  %v445_v44 = vsel %vm175_vm1, 0.0, %v444_v1  ;;  %v760_v0 = vrot.slane %v2032_v61, 4  ;;  %v1417_v1 = vpop.permute.xlu2 %1416 }
  0xe3   : > { %v655_v15 = vrot.slane %v2150_v35, 4  ;;  %v1049_v46 = vsel %vm175_vm1, %v1048_v38, %v1992_v22  ;;  %v971_v57 = vrot.slane %v2048_v12, 4  ;;  %v339_v49 = vrot.slane %v324_v40, 4  ;;  %v1402_v40 = vpop.permute.xlu0 %1401 }
  0xe4   : > { %1461 = vrot.lane.b32.xlu0 %v1460_v17, %s1607_s21  ;;  %v338_v45 = vsel %vm175_vm1, 0.0, %v337_v36  ;;  %v443_v63 = vsel %vm175_vm1, 0.0, %v442_v50  ;;  %v2169_v32 = vperm.slane %v1049_v46, %v1722_v16  ;;  %v761_v61 = vsel %vm175_vm1, 0.0, %v760_v0 }
  0xe5   : > { %v656_v55 = vsel %vm175_vm1, 0.0, %v655_v15  ;;  %v972_v22 = vsel %vm175_vm1, 0.0, %v971_v57  ;;  %v657_v52 = vrot.slane %v642_v28, 4  ;;  %v340_v3 = vsel %vm175_vm1, 0.0, %v339_v49 }
  0xe6   : > { %1446 = vrot.lane.b32.xlu1 %v1445_v25, %s1606_s18  ;;  %v1475_v56 = vpack.i.bf16 %v338_v45, %v656_v55  ;;  %v1470_v51 = vpack.i.bf16 %v761_v61, %v972_v22  ;;  %v1072_v12 = vrot.slane %v2169_v32, 4  ;;  %v1076_v14 = vrot.slane %v1932_v23, 4  ;;  %s1173_s18 = scalar_lea.hbm %s2375_s2, %s1264_s7 }
  0xe7   : > { %v658_v4 = vsel %vm175_vm1, 0.0, %v657_v52  ;;  %v659_v42 = vrot.slane %v650_v59, 4  ;;  %v1074_v13 = vrot.slane %v2075_v2, 4  ;;  %v341_v17 = vrot.slane %v332_v27, 4 }
  0xe8   : > { %v1073_v60 = vsel %vm175_vm1, 0.0, %v1072_v12  ;;  %v1485_v5 = vpack.i.bf16 %v340_v3, %v658_v4  ;;  %v1077_v28 = vsel %vm175_vm1, 0.0, %v1076_v14  ;;  %v762_v34 = vrot.slane %v2081_v37, 4 }
  0xe9   : > { %v660_v18 = vsel %vm175_vm1, 0.0, %v659_v42  ;;  %v1404_v19 = vunpack.i.h.bf16 %v1402_v40  ;;  %v1403_v21 = vunpack.i.l.bf16 %v1402_v40  ;;  %v430_v23 = vrot.slane %v1995_v24, 4 }
  0xea   : > { %1456 = vrot.lane.b32.xlu2 %v1455_v31, %s1605_s17  ;;  %v1075_v59 = vsel %vm175_vm1, 0.0, %v1074_v13  ;;  %v342_v25 = vsel %vm175_vm1, 0.0, %v341_v17  ;;  %v1078_v62 = vrot.slane %v2090_v7, 4  ;;  %v763_v27 = vsel %vm175_vm1, 0.0, %v762_v34 }
  0xeb   : > { %v1495_v2 = vpack.i.bf16 %v342_v25, %v660_v18  ;;  %v973_v30 = vrot.slane %v2097_v39, 4  ;;  %v431_v37 = vsel %vm175_vm1, %v1987_v20, %v430_v23  ;;  %v588_v24 = vsel %vm259_vm3, %v1835_v41, %v1404_v19  ;;  %v1422_v39 = vpop.permute.xlu1 %1421 }
  0xec   : > { %1466 = vrot.lane.b32.xlu0 %v1465_v53, %s1608_s24  ;;  %v902_v26 = vsel %vm259_vm3, %v1838_v48, %v1403_v21  ;;  %v1414_v31 = vunpack.i.h.bf16 %v1412_v9  ;;  %v1413_v29 = vunpack.i.l.bf16 %v1412_v9  ;;  %v1407_v53 = vpop.permute.xlu0 %1406  ;;  %v1419_v38 = vunpack.i.h.bf16 %v1417_v1 }
  0xed   : > { %v1409_v7 = vunpack.i.h.bf16 %v1407_v53  ;;  %v1408_v36 = vunpack.i.l.bf16 %v1407_v53  ;;  %v1418_v50 = vunpack.i.l.bf16 %v1417_v1  ;;  %v1079_v15 = vsel %vm175_vm1, 0.0, %v1078_v62 }
  0xee   : > { %465 = vrot.lane.b32.xlu1 %v445_v44, %s1611_s28  ;;  %v439_v20 = vperm.slane %v431_v37, %v1722_v16  ;;  %v1424_v44 = vunpack.i.h.bf16 %v1422_v39  ;;  %v1423_v0 = vunpack.i.l.bf16 %v1422_v39  ;;  %v974_v41 = vsel %vm175_vm1, 0.0, %v973_v30 }
  0xef   : > { %v589_v48 = vsel %vm261_vm4, %v588_v24, %v1409_v7  ;;  %v903_v46 = vsel %vm261_vm4, %v902_v26, %v1408_v36  ;;  %v1480_v45 = vpack.i.bf16 %v763_v27, %v974_v41  ;;  %v764_v55 = vrot.slane %v2024_v43, 4 }
  0xf0   : > { %v590_v57 = vsel %vm263_vm5, %v589_v48, %v1414_v31  ;;  %v446_v61 = vrot.slane %v439_v20, 4  ;;  %v661_v14 = vrot.slane %v2112_v33, 4 }
  0xf1   : > { %v765_v43 = vsel %vm175_vm1, 0.0, %v764_v55 }
  0xf2   : > { %457 = vrot.lane.b32.xlu2 %v443_v63, %s1609_s25  ;;  %v904_v63 = vsel %vm263_vm5, %v903_v46, %v1413_v29  ;;  %v447_v3 = vsel %vm175_vm1, 0.0, %v446_v61  ;;  %v662_v42 = vsel %vm175_vm1, 0.0, %v661_v14 }
  0xf3   : > { %v905_v16 = vsel %vm265_vm6, %v904_v63, %v1418_v50  ;;  %v2234_v13 = vpop.permute.xlu1 %1431 }
  0xf4   : > { %1476 = vrot.lane.b32.xlu0 %v1475_v56, %s1608_s24  ;;  %v591_v56 = vsel %vm265_vm6, %v590_v57, %v1419_v38  ;;  %v2216_v22 = vsel %vm267_vm7, %v905_v16, %v1423_v0  ;;  %v2220_v12 = vpop.permute.xlu0 %1426  ;;  %v1434_v17 = vunpack.i.h.bf16 %v2234_v13 }
  0xf5   : > { %v592_v49 = vsel %vm267_vm7, %v591_v56, %v1424_v44  ;;  %v1429_v52 = vunpack.i.h.bf16 %v2220_v12 }
  0xf6   : > { %1471 = vrot.lane.b32.xlu1 %v1470_v51, %s1609_s25  ;;  %v975_v51 = vrot.slane %v2027_v47, 4  ;;  %v343_v47 = vrot.slane %v2122_v6, 4 }
  0xf7   : > { %v593_v4 = vsel %vm269_vm8, %v592_v49, %v1429_v52 }
  0xf8   : > { %v344_v40 = vsel %vm175_vm1, 0.0, %v343_v47 }
  0xf9   : > { %v1500_v9 = vpack.i.bf16 %v344_v40, %v662_v42 }
  0xfa   : > { %1081 = vrot.lane.b32.xlu2 %v1073_v60, %s1608_s24  ;;  %v976_v60 = vsel %vm175_vm1, 0.0, %v975_v51  ;;  %v1428_v51 = vunpack.i.l.bf16 %v2220_v12 }
  0xfc   : > { %1486 = vrot.lane.b32.xlu0 %v1485_v5, %s1609_s25  ;;  %v1490_v5 = vpack.i.bf16 %v765_v43, %v976_v60 }
  0xfe   : > { %1097 = vrot.lane.b32.xlu1 %v1077_v28, %s1611_s28  ;;  %v2238_v28 = vsel %vm271_vm9, %v593_v4, %v1434_v17 }
 0x102   : > { %1089 = vrot.lane.b32.xlu2 %v1075_v59, %s1609_s25  ;;  %s1177_s25 = sshll.u32 %s1173_s18, 4  ;;  %s1178_s25 = int_to_ptr.hbm [resolvable:$true] %s1177_s25 }
 0x104   : > { %1496 = vrot.lane.b32.xlu0 %v1495_v2, %s1611_s28 }
 0x106   : > { %1105 = vrot.lane.b32.xlu1 %v1079_v15, %s1610_s26 }
 0x10a   : > { %1481 = vrot.lane.b32.xlu2 %v1480_v45, %s1611_s28  ;;  %s1519_s28 = sshra.s32 %s1178_s25, 4  ;;  %s1520_s28 = int_to_ptr.hbm [resolvable:$true] %s1519_s28 }
 0x10b   : > { %s1521_s13 = scalar_lea.hbm %s1520_s28, 8  ;;  %p1526_p2 = scmp.lt.s32.totalorder %s1520_s28, %s2375_s2 }
 0x10c   : > { %469 = vrot.lane.b32.xlu0 %v439_v20, %s1607_s21  ;;  %s150_s21 = scalar_lea.vmem [#allocation2], %s1257_s6  ;;  %p1522_p13 = scmp.ne.s32.totalorder %s1520_s28, %s1521_s13 }
 0x10d   : > { %s1175_s24 = sshll.u32 %s150_s21, 4  ;;  %p1527_p4 = scmp.lt.s32.totalorder %s1525_s30, %s1521_s13  ;;  %s1176_s24 = int_to_ptr.vmem [resolvable:$true] %s1175_s24 }
 0x10e   : > { %473 = vrot.lane.b32.xlu1 %v447_v3, %s1610_s26  ;;  %p1523_p0 = pnand %p1522_p13, %p1678_p3 }
 0x10f   : > { %p1528_p5 = por %p1527_p4, %p1526_p2 }
 0x110   : > { %p1524_p1 = pneg %p1523_p0 }
 0x112   : > { %1491 = vrot.lane.b32.xlu2 %v1490_v5, %s1610_s26  ;;  %p1529_p6 = pnand %p1528_p5, %p1524_p1 }
 0x11a   : > { %1501 = vrot.lane.b32.xlu2 %v1500_v9, %s1610_s26  ;;  %s1161_s26 = scalar_lea.sflag [#allocation3], %s148_s4 }
 0x12c   : > { %v2240_v18 = vpop.permute.xlu2 %461 }
 0x134   : > { %v1086_v33 = vpop.permute.xlu2 %1085 }
 0x137   : > { %v2242_v19 = vpop.permute.xlu0 %1093 }
 0x13c   : > { %v450_v34 = vpop.permute.xlu2 %449 }
 0x140   : > { %v2244_v6 = vpop.permute.xlu1 %453 }
 0x144   : > { %v2246_v21 = vpop.permute.xlu2 %1456 }
 0x146   : > { %v1452_v23 = vpop.permute.xlu0 %1451 }
 0x147   : > { %v1454_v43 = vunpack.i.h.bf16 %v1452_v23  ;;  %v1453_v60 = vunpack.i.l.bf16 %v1452_v23 }
 0x148   : > { %v1437_v59 = vpop.permute.xlu1 %1436 }
 0x149   : > { %v1439_v50 = vunpack.i.h.bf16 %v1437_v59  ;;  %v1438_v39 = vunpack.i.l.bf16 %v1437_v59 }
 0x14c   : > { %v2248_v25 = vpop.permute.xlu2 %457 }
 0x14e   : > { %v2250_v2 = vpop.permute.xlu0 %1101 }
 0x150   : > { %v1442_v62 = vpop.permute.xlu1 %1441 }
 0x151   : > { %v1444_v0 = vunpack.i.h.bf16 %v1442_v62  ;;  %v1443_v41 = vunpack.i.l.bf16 %v1442_v62 }
 0x154   : > { %v1082_v27 = vpop.permute.xlu2 %1081 }
 0x156   : > { %v2252_v30 = vpop.permute.xlu0 %1461 }
 0x158   : > { %v1447_v37 = vpop.permute.xlu1 %1446 }
 0x159   : > { %v1449_v12 = vunpack.i.h.bf16 %v1447_v37  ;;  %v1448_v17 = vunpack.i.l.bf16 %v1447_v37 }
 0x15c   : > { %v1090_v24 = vpop.permute.xlu2 %1089 }
 0x15e   : > { %v1467_v26 = vpop.permute.xlu0 %1466 }
 0x15f   : > { %v1469_v29 = vunpack.i.h.bf16 %v1467_v26  ;;  %v1468_v53 = vunpack.i.l.bf16 %v1467_v26 }
 0x160   : > { %v2254_v31 = vpop.permute.xlu1 %465 }
 0x161   : > { %v794_v36 = vsel %vm259_vm3, %v2119_v11, %v1469_v29  ;;  %v1005_v38 = vsel %vm259_vm3, %v2129_v58, %v1468_v53  ;;  %v1108_v58 = vsel %vm259_vm3, %v2169_v32, %v1082_v27 }
 0x162   : > { %v795_v48 = vsel %vm261_vm4, %v794_v36, %v1439_v50  ;;  %v1006_v46 = vsel %vm261_vm4, %v1005_v38, %v1438_v39  ;;  %v1109_v4 = vsel %vm261_vm4, %v1108_v58, %v1086_v33  ;;  %v1433_v33 = vunpack.i.l.bf16 %v2234_v13 }
 0x163   : > { %v1110_v59 = vsel %vm263_vm5, %v1109_v4, %v1090_v24  ;;  %v1464_v38 = vunpack.i.h.bf16 %v2252_v30 }
 0x164   : > { %v1482_v1 = vpop.permute.xlu2 %1481  ;;  %v1111_v13 = vsel %vm265_vm6, %v1110_v59, %v2242_v19  ;;  %v1463_v19 = vunpack.i.l.bf16 %v2252_v30 }
 0x165   : > { %v1483_v56 = vunpack.i.l.bf16 %v1482_v1  ;;  %v1484_v52 = vunpack.i.h.bf16 %v1482_v1 }
 0x166   : > { %v1477_v7 = vpop.permute.xlu0 %1476 }
 0x167   : > { %v1479_v45 = vunpack.i.h.bf16 %v1477_v7  ;;  %v1478_v57 = vunpack.i.l.bf16 %v1477_v7 }
 0x168   : > { %v1472_v15 = vpop.permute.xlu1 %1471 }
 0x169   : > { %v1474_v20 = vunpack.i.h.bf16 %v1472_v15  ;;  %v1473_v44 = vunpack.i.l.bf16 %v1472_v15  ;;  %v373_v5 = vsel %vm259_vm3, %v2146_v10, %v1479_v45  ;;  %v691_v32 = vsel %vm259_vm3, %v2150_v35, %v1478_v57 }
 0x16a   : > { %v907_v10 = vsel %vm269_vm8, %v2216_v22, %v1428_v51  ;;  %v476_v35 = vsel %vm259_vm3, %v2084_v8, %v450_v34  ;;  %v374_v27 = vsel %vm261_vm4, %v373_v5, %v1449_v12  ;;  %v692_v26 = vsel %vm261_vm4, %v691_v32, %v1448_v17 }
 0x16b   : > { %v796_v63 = vsel %vm263_vm5, %v795_v48, %v1474_v20  ;;  %v1007_v11 = vsel %vm263_vm5, %v1006_v46, %v1473_v44  ;;  %v477_v22 = vsel %vm261_vm4, %v476_v35, %v2244_v6  ;;  %v1459_v8 = vunpack.i.h.bf16 %v2246_v21 }
 0x16c   : > { %v1492_v55 = vpop.permute.xlu2 %1491  ;;  %v1008_v16 = vsel %vm265_vm6, %v1007_v11, %v1443_v41  ;;  %v797_v61 = vsel %vm265_vm6, %v796_v63, %v1444_v0  ;;  %v1458_v34 = vunpack.i.l.bf16 %v2246_v21  ;;  %v478_v45 = vsel %vm263_vm5, %v477_v22, %v2248_v25 }
 0x16d   : > { %v1009_v3 = vsel %vm267_vm7, %v1008_v16, %v1483_v56  ;;  %v1493_v14 = vunpack.i.l.bf16 %v1492_v55  ;;  %v798_v9 = vsel %vm267_vm7, %v797_v61, %v1484_v52  ;;  %v1494_v62 = vunpack.i.h.bf16 %v1492_v55 }
 0x16e   : > { %v1487_v49 = vpop.permute.xlu0 %1486  ;;  %v1010_v23 = vsel %vm269_vm8, %v1009_v3, %v1453_v60  ;;  %v799_v29 = vsel %vm269_vm8, %v798_v9, %v1454_v43  ;;  %v908_v11 = vsel %vm271_vm9, %v907_v10, %v1433_v33  ;;  %v479_v25 = vsel %vm265_vm6, %v478_v45, %v2240_v18 }
 0x16f   : > { %v1489_v47 = vunpack.i.h.bf16 %v1487_v49  ;;  %v1488_v42 = vunpack.i.l.bf16 %v1487_v49  ;;  %v1011_v53 = vsel %vm271_vm9, %v1010_v23, %v1493_v14  ;;  %v800_v15 = vsel %vm271_vm9, %v799_v29, %v1494_v62 }
 0x170   : > { %v1098_v40 = vpop.permute.xlu1 %1097  ;;  %v1125_v44 = vrot.slane %v1011_v53, 4  ;;  %v1122_v63 = vrot.slane %v800_v15, 4  ;;  %v480_v61 = vsel %vm267_vm7, %v479_v25, %v2254_v31  ;;  %v1119_v3 = vrot.slane %v2238_v28, 4  ;;  %v1131_v31 = vld [vmem:[%s2374_s1] sm:$0xff] }
 0x171   : > { %v375_v37 = vsel %vm263_vm5, %v374_v27, %v1489_v47  ;;  %v693_v24 = vsel %vm263_vm5, %v692_v26, %v1488_v42  ;;  %v1112_v1 = vsel %vm267_vm7, %v1111_v13, %v1098_v40 }
 0x172   : > { %v376_v20 = vsel %vm265_vm6, %v375_v37, %v1459_v8  ;;  %v694_v6 = vsel %vm265_vm6, %v693_v24, %v1458_v34  ;;  %v1113_v46 = vsel %vm269_vm8, %v1112_v1, %v2250_v2  ;;  %v1130_v16 = vsel %vm801_vm0, %v908_v11, %v1125_v44 }
 0x174   : > { %v1502_v7 = vpop.permute.xlu2 %1501 }
 0x175   : > { %v1503_v0 = vunpack.i.l.bf16 %v1502_v7  ;;  %v1504_v56 = vunpack.i.h.bf16 %v1502_v7 }
 0x176   : > { %v1497_v36 = vpop.permute.xlu0 %1496 }
 0x177   : > { %v1499_v50 = vunpack.i.h.bf16 %v1497_v36  ;;  %v1498_v39 = vunpack.i.l.bf16 %v1497_v36 }
 0x178   : > { %v1106_v48 = vpop.permute.xlu1 %1105 }
 0x179   : > { %v377_v21 = vsel %vm267_vm7, %v376_v20, %v1499_v50  ;;  %v695_v41 = vsel %vm267_vm7, %v694_v6, %v1498_v39  ;;  %v1114_v57 = vsel %vm271_vm9, %v1113_v46, %v1106_v48 }
 0x17a   : > { %v696_v30 = vsel %vm269_vm8, %v695_v41, %v1463_v19  ;;  %1260 = vmatpush.msk.msra.mxu0 %vm801_vm0, %v1114_v57  ;;  %v378_v58 = vsel %vm269_vm8, %v377_v21, %v1464_v38 }
 0x17b   : > { %v697_v55 = vsel %vm271_vm9, %v696_v30, %v1503_v0  ;;  %v379_v51 = vsel %vm271_vm9, %v378_v58, %v1504_v56 }
 0x17c   : > { %v1129_v2 = vsel %vm801_vm0, %v697_v55, %v1122_v63  ;;  %1151 = vmatpush.msra.mxu0 %v1130_v16  ;;  %v1116_v60 = vrot.slane %v379_v51, 4 }
 0x17e   : > { %v470_v49 = vpop.permute.xlu0 %469  ;;  %1152 = vmatpush.msra.mxu0 %v1129_v2  ;;  %v1127_v5 = vsel %vm801_vm0, %v1896_v54, %v1116_v60 }
 0x17f   : > { %v481_v43 = vsel %vm269_vm8, %v480_v61, %v470_v49 }
 0x180   : > { %v474_v52 = vpop.permute.xlu1 %473 }
 0x181   : > { %v482_v4 = vsel %vm271_vm9, %v481_v43, %v474_v52 }
 0x182   : > { %v1128_v18 = vsel %vm801_vm0, %v482_v4, %v1119_v3 }
 0x183   : > { %1153 = vmatpush.msra.mxu0 %v1128_v18 }
 0x185   : > { %1154 = vmatpush.msra.mxu0 %v1127_v5 }
 0x186   : > { %1261 = vmatmul.msk.f32.vlgmr.msra.gmra.mxu0 %vm1132_vm10, %v1131_v31 }
 0x203   : > { %v1156_v28 = vpop.f32.mrf.mxu0 }
 0x204   : > { %1159 = vst [vmem:[%s150_s21] sm:$0xff] %v1156_v28 }
 0x205   : > { %1532 = shalt.err (!%p1529_p6)
}
 0x206   : > { %1268 = dma.vmem_to_hbm [thread:$0]  (%p1678_p3), %s1176_s24, 128, %s1178_s25, %s1161_s26  }
 0x207 PF: > { %p1274_p7 = scmp.ge.s32.totalorder %s1599_s16, 2  ;;  %s1189_s4 = sand.u32 1, %s1571_s9  }
 0x208   : > { %s1190_s6 = scalar_lea.sflag [#allocation3], %s1189_s4 }
 0x209   : > { %p1271_p9 = pnand %p1274_p7, %p1687_p8 }
 0x20b   : > { %p1272_p10 = pneg %p1271_p9 }
 0x20d   : > { %1566 = dma.done.wait (%p1272_p10), %s1190_s6, 128  }
 0x20e   : > { %1568 = vsyncadd (%p1272_p10), %s1190_s6, 4294967168  ;;  %s15_s16 = sadd.s32 1, %s1599_s16   ;;  %s2378_s9 = smov %s1575_s10 }
 0x20f   : > { %p12_p11 = scmp.ge.s32.totalorder %s15_s16, 6   ;;  %s2379_s10 = smov %s1579_s11 }
 0x210   : > { %s2380_s11 = smov %s1696_s27  ;;  %s2381_s12 = smov %s1591_s14 }
 0x211   : > { %s2382_s13 = smov %s1595_s15  ;;  %s2383_s14 = smov %s2386_s19 }
 0x212   : > { %s2384_s15 = smov %s2390_s20  ;;  %14 = sbr.rel (!%p12_p11) target bundleno = 5 (0x5), region = 64 }
 0x217   :  { %1196 = vsyncpa [#allocation3], 1 }
 0x218   :  { %1198 = vsyncpa [#allocation3 + $0x1], 1 }

</bundles_post_ra>
